<compile_context>
chip_gen: v5e
topology: v5e:2x2
jax: 0.10.0
libtpu: 0.0.40
codegen_flags: <defaults>
</compile_context>

<pallas_src>
import functools

import jax
import jax.numpy as jnp
from jax.experimental import pallas as pl
from jax.experimental.pallas import tpu as pltpu


def _round_up(x, m):
    return -(-x // m) * m


def _choose_tile_n(n_nodes):
    """Node-tile size: large, 256-aligned when possible, >=2 grid steps
    (so megacore chips can shard the 'parallel' grid axis)."""
    if n_nodes < 16:
        return 8
    if n_nodes < 512:
        # two sublane-aligned tiles
        return _round_up(_round_up(n_nodes, 2) // 2, 8)
    # >= 512 nodes: multiple of 256, at most 1024, at least 2 grid steps
    return max(256, min(1024, (n_nodes // 2) // 256 * 256))


def _mlp_kernel(n_layers, *refs):
    """Full MLP chain for one tile of nodes, fused in VMEM.

    refs = (x_ref, w0_ref, b0_ref, w1_ref, b1_ref, ..., o_ref)
    x_ref / w*_ref are bf16 (MXU operands), b*_ref are f32, o_ref is f32.
    """
    x_ref = refs[0]
    param_refs = refs[1:1 + 2 * n_layers]
    o_ref = refs[1 + 2 * n_layers]

    h = x_ref[...]                                     # bf16 (tile_n, in_p)
    for layer in range(n_layers):
        w = param_refs[2 * layer][...]                 # bf16 (in_p, out_p)
        b = param_refs[2 * layer + 1][...]             # f32  (1, out_p)
        acc = jnp.dot(h, w, preferred_element_type=jnp.float32) + b
        if layer < n_layers - 1:                       # activate_last=False
            acc = acc * jax.nn.sigmoid(acc)            # SiLU in f32 (VPU + EUP)
            h = acc.astype(jnp.bfloat16)               # bf16 operand for next MXU pass
        else:
            h = acc
    o_ref[...] = h.astype(o_ref.dtype)


def mlp_readout(node_feat, weights, biases, *, tile_n=None):
    """Pallas wrapper.

    node_feat: (N, in_feats) float array.
    weights[i]: (d_in, d_out)  -- PyTorch W^T, so kernel does x @ W directly.
    biases[i]:  (1, d_out)
    Returns (N, num_targets) float32.
    """
    N, F = node_feat.shape
    n_layers = len(weights)
    out_dim = weights[-1].shape[1]

    # Lane-pad every feature dim to a multiple of 128.
    dims = [F] + [w.shape[1] for w in weights]
    pdims = [_round_up(d, 128) for d in dims]

    if tile_n is None:
        tile_n = _choose_tile_n(N)
    Np = _round_up(N, tile_n)

    # Zero-padded bf16 node features (padding rows/cols contribute nothing).
    x_p = jnp.zeros((Np, pdims[0]), jnp.bfloat16)
    x_p = x_p.at[:N, :F].set(node_feat.astype(jnp.bfloat16))

    in_specs = [pl.BlockSpec((tile_n, pdims[0]), lambda i: (i, 0))]
    flat_params = []
    for li, (w, b) in enumerate(zip(weights, biases)):
        d_in, d_out = w.shape
        w_p = jnp.zeros((pdims[li], pdims[li + 1]), jnp.bfloat16)
        w_p = w_p.at[:d_in, :d_out].set(w.astype(jnp.bfloat16))
        b_p = jnp.zeros((1, pdims[li + 1]), jnp.float32)
        b_p = b_p.at[:, :d_out].set(b.astype(jnp.float32))
        flat_params.extend([w_p, b_p])
        # Small weights/biases: full-array blocks, resident across the grid.
        in_specs.append(pl.BlockSpec(w_p.shape, lambda i: (0, 0)))
        in_specs.append(pl.BlockSpec(b_p.shape, lambda i: (0, 0)))

    kernel = functools.partial(_mlp_kernel, n_layers)
    out_p = pl.pallas_call(
        kernel,
        out_shape=jax.ShapeDtypeStruct((Np, pdims[-1]), jnp.float32),
        grid=(Np // tile_n,),
        in_specs=in_specs,
        out_specs=pl.BlockSpec((tile_n, pdims[-1]), lambda i: (i, 0)),
        compiler_params=pltpu.CompilerParams(
            dimension_semantics=("parallel",)),
    )(x_p, *flat_params)

    # Slice back the lane/row padding.
    return out_p[:N, :out_dim]


def init_mlp_params(key, layer_dims):
    """Deterministic synthetic init. Weights stored as (in, out) == PyTorch W^T."""
    weights, biases = [], []
    for d_in, d_out in zip(layer_dims[:-1], layer_dims[1:]):
        key, wk, bk = jax.random.split(key, 3)
        bound = 1.0 / jnp.sqrt(d_in)
        w = jax.random.uniform(wk, (d_in, d_out), jnp.float32, -bound, bound)
        b = jax.random.uniform(bk, (1, d_out), jnp.float32, -bound, bound)
        weights.append(w)
        biases.append(b)
    return weights, biases


def mlp_readout_ref(node_feat, weights, biases, operand_dtype=jnp.float32):
    """Plain-JAX reference. With operand_dtype=bfloat16 it emulates the kernel's
    precision (bf16 operands, f32 accumulation / bias / SiLU)."""
    def q(a):
        return a.astype(operand_dtype).astype(jnp.float32)

    h = q(node_feat)
    n_layers = len(weights)
    for i, (w, b) in enumerate(zip(weights, biases)):
        h = h @ q(w) + b.astype(jnp.float32)
        if i < n_layers - 1:
            h = h * jax.nn.sigmoid(h)
            h = q(h)
    return h


if __name__ == "__main__":
    # MLPReadOut(in_feats=32, dims=(64, 64), num_targets=1) -> dims [32, 64, 64, 1]
    in_feats = 32
    hidden_dims = (64, 64)
    num_targets = 1
    layer_dims = [in_feats, *hidden_dims, num_targets]

    num_nodes = 57  # deliberately not a multiple of the tile size (ragged path)

    key = jax.random.PRNGKey(0)
    key, xk = jax.random.split(key)
    node_feat = jax.random.normal(xk, (num_nodes, in_feats), jnp.float32)
    weights, biases = init_mlp_params(key, layer_dims)

    out = mlp_readout(node_feat, weights, biases)
    out = jax.block_until_ready(out)
    assert out.shape == (num_nodes, num_targets)

    # Tight check vs. a bf16-operand-emulating reference (same numeric path).
    ref_bf16 = mlp_readout_ref(node_feat, weights, biases, operand_dtype=jnp.bfloat16)
    assert jnp.allclose(out, ref_bf16, atol=2e-3, rtol=2e-3), "mismatch vs bf16-emulated reference"

    # Loose sanity check vs. the exact f32 reference (bf16 operand rounding only).
    ref_f32 = mlp_readout_ref(node_feat, weights, biases)
    assert jnp.allclose(out, ref_f32, atol=8e-2, rtol=8e-2), "mismatch vs f32 reference"

    print("KERNEL_OK")
</pallas_src>

<mosaic_0001>
module attributes {stable_mosaic.version = 11 : i64} {
  func.func @_mlp_kernel(%arg0: i32, %arg1: memref<32x128xbf16, #tpu.memory_space<vmem>>, %arg2: memref<128x128xbf16, #tpu.memory_space<vmem>>, %arg3: memref<1x128xf32, #tpu.memory_space<vmem>>, %arg4: memref<128x128xbf16, #tpu.memory_space<vmem>>, %arg5: memref<1x128xf32, #tpu.memory_space<vmem>>, %arg6: memref<128x128xbf16, #tpu.memory_space<vmem>>, %arg7: memref<1x128xf32, #tpu.memory_space<vmem>>, %arg8: memref<32x128xf32, #tpu.memory_space<vmem>>) attributes {dimension_semantics = [#tpu.dimension_semantics<parallel>], iteration_bounds = array<i64: 2>, scalar_prefetch = 0 : i64, scratch_operands = 0 : i64, tpu.core_type = #tpu.core_type<tc>, window_params = [{transform_indices = @transform_0, window_bounds = array<i64: 32, 128>}, {pipeline_mode = #tpu.pipeline_mode<synchronous>, transform_indices = @transform_1, window_bounds = array<i64: 128, 128>}, {pipeline_mode = #tpu.pipeline_mode<synchronous>, transform_indices = @transform_2, window_bounds = array<i64: 1, 128>}, {pipeline_mode = #tpu.pipeline_mode<synchronous>, transform_indices = @transform_3, window_bounds = array<i64: 128, 128>}, {pipeline_mode = #tpu.pipeline_mode<synchronous>, transform_indices = @transform_4, window_bounds = array<i64: 1, 128>}, {pipeline_mode = #tpu.pipeline_mode<synchronous>, transform_indices = @transform_5, window_bounds = array<i64: 128, 128>}, {pipeline_mode = #tpu.pipeline_mode<synchronous>, transform_indices = @transform_6, window_bounds = array<i64: 1, 128>}, {transform_indices = @transform_7, window_bounds = array<i64: 32, 128>}]} {
    %c0 = arith.constant 0 : index
    %c0_0 = arith.constant 0 : index
    %0 = vector.load %arg1[%c0, %c0_0] : memref<32x128xbf16, #tpu.memory_space<vmem>>, vector<32x128xbf16>
    %c0_1 = arith.constant 0 : index
    %c0_2 = arith.constant 0 : index
    %1 = vector.load %arg2[%c0_1, %c0_2] : memref<128x128xbf16, #tpu.memory_space<vmem>>, vector<128x128xbf16>
    %c0_3 = arith.constant 0 : index
    %c0_4 = arith.constant 0 : index
    %2 = vector.load %arg3[%c0_3, %c0_4] : memref<1x128xf32, #tpu.memory_space<vmem>>, vector<1x128xf32>
    %cst = arith.constant dense<0.000000e+00> : vector<32x128xf32>
    %3 = tpu.matmul %0, %1, %cst {dimension_numbers = #tpu.dot_dimension_numbers<[1], [0], [0], [1], [0, 0, 1, 1], [], []>} : vector<32x128xbf16>, vector<128x128xbf16>, vector<32x128xf32> -> vector<32x128xf32>
    %4 = vector.broadcast %2 : vector<1x128xf32> to vector<32x128xf32>
    %5 = arith.addf %3, %4 : vector<32x128xf32>
    %6 = arith.negf %5 : vector<32x128xf32>
    %7 = math.exp %6 : vector<32x128xf32>
    %cst_5 = arith.constant 1.000000e+00 : f32
    %8 = vector.broadcast %cst_5 : f32 to vector<32x128xf32>
    %9 = arith.addf %8, %7 : vector<32x128xf32>
    %10 = arith.divf %8, %9 : vector<32x128xf32>
    %11 = arith.mulf %5, %10 : vector<32x128xf32>
    %12 = arith.truncf %11 : vector<32x128xf32> to vector<32x128xbf16>
    %c0_6 = arith.constant 0 : index
    %c0_7 = arith.constant 0 : index
    %13 = vector.load %arg4[%c0_6, %c0_7] : memref<128x128xbf16, #tpu.memory_space<vmem>>, vector<128x128xbf16>
    %c0_8 = arith.constant 0 : index
    %c0_9 = arith.constant 0 : index
    %14 = vector.load %arg5[%c0_8, %c0_9] : memref<1x128xf32, #tpu.memory_space<vmem>>, vector<1x128xf32>
    %cst_10 = arith.constant dense<0.000000e+00> : vector<32x128xf32>
    %15 = tpu.matmul %12, %13, %cst_10 {dimension_numbers = #tpu.dot_dimension_numbers<[1], [0], [0], [1], [0, 0, 1, 1], [], []>} : vector<32x128xbf16>, vector<128x128xbf16>, vector<32x128xf32> -> vector<32x128xf32>
    %16 = vector.broadcast %14 : vector<1x128xf32> to vector<32x128xf32>
    %17 = arith.addf %15, %16 : vector<32x128xf32>
    %18 = arith.negf %17 : vector<32x128xf32>
    %19 = math.exp %18 : vector<32x128xf32>
    %cst_11 = arith.constant 1.000000e+00 : f32
    %20 = vector.broadcast %cst_11 : f32 to vector<32x128xf32>
    %21 = arith.addf %20, %19 : vector<32x128xf32>
    %22 = arith.divf %20, %21 : vector<32x128xf32>
    %23 = arith.mulf %17, %22 : vector<32x128xf32>
    %24 = arith.truncf %23 : vector<32x128xf32> to vector<32x128xbf16>
    %c0_12 = arith.constant 0 : index
    %c0_13 = arith.constant 0 : index
    %25 = vector.load %arg6[%c0_12, %c0_13] : memref<128x128xbf16, #tpu.memory_space<vmem>>, vector<128x128xbf16>
    %c0_14 = arith.constant 0 : index
    %c0_15 = arith.constant 0 : index
    %26 = vector.load %arg7[%c0_14, %c0_15] : memref<1x128xf32, #tpu.memory_space<vmem>>, vector<1x128xf32>
    %cst_16 = arith.constant dense<0.000000e+00> : vector<32x128xf32>
    %27 = tpu.matmul %24, %25, %cst_16 {dimension_numbers = #tpu.dot_dimension_numbers<[1], [0], [0], [1], [0, 0, 1, 1], [], []>} : vector<32x128xbf16>, vector<128x128xbf16>, vector<32x128xf32> -> vector<32x128xf32>
    %28 = vector.broadcast %26 : vector<1x128xf32> to vector<32x128xf32>
    %29 = arith.addf %27, %28 : vector<32x128xf32>
    %c0_17 = arith.constant 0 : index
    %c0_18 = arith.constant 0 : index
    %30 = vector.load %arg8[%c0_17, %c0_18] : memref<32x128xf32, #tpu.memory_space<vmem>>, vector<32x128xf32>
    tpu.vector_store %arg8[%c0_17, %c0_18], %29 {strides = array<i32>} : memref<32x128xf32, #tpu.memory_space<vmem>>, vector<32x128xf32>,
    return
  }
  func.func @transform_0(%arg0: i32) -> (i32, i32) {
    %c0_i32 = arith.constant 0 : i32
    %c0_i32_0 = arith.constant 0 : i32
    return %arg0, %c0_i32 : i32, i32
  }
  func.func @transform_1(%arg0: i32) -> (i32, i32) {
    %c0_i32 = arith.constant 0 : i32
    %c0_i32_0 = arith.constant 0 : i32
    %c0_i32_1 = arith.constant 0 : i32
    return %c0_i32, %c0_i32_0 : i32, i32
  }
  func.func @transform_2(%arg0: i32) -> (i32, i32) {
    %c0_i32 = arith.constant 0 : i32
    %c0_i32_0 = arith.constant 0 : i32
    %c0_i32_1 = arith.constant 0 : i32
    return %c0_i32, %c0_i32_0 : i32, i32
  }
  func.func @transform_3(%arg0: i32) -> (i32, i32) {
    %c0_i32 = arith.constant 0 : i32
    %c0_i32_0 = arith.constant 0 : i32
    %c0_i32_1 = arith.constant 0 : i32
    return %c0_i32, %c0_i32_0 : i32, i32
  }
  func.func @transform_4(%arg0: i32) -> (i32, i32) {
    %c0_i32 = arith.constant 0 : i32
    %c0_i32_0 = arith.constant 0 : i32
    %c0_i32_1 = arith.constant 0 : i32
    return %c0_i32, %c0_i32_0 : i32, i32
  }
  func.func @transform_5(%arg0: i32) -> (i32, i32) {
    %c0_i32 = arith.constant 0 : i32
    %c0_i32_0 = arith.constant 0 : i32
    %c0_i32_1 = arith.constant 0 : i32
    return %c0_i32, %c0_i32_0 : i32, i32
  }
  func.func @transform_6(%arg0: i32) -> (i32, i32) {
    %c0_i32 = arith.constant 0 : i32
    %c0_i32_0 = arith.constant 0 : i32
    %c0_i32_1 = arith.constant 0 : i32
    return %c0_i32, %c0_i32_0 : i32, i32
  }
  func.func @transform_7(%arg0: i32) -> (i32, i32) {
    %c0_i32 = arith.constant 0 : i32
    %c0_i32_0 = arith.constant 0 : i32
    return %arg0, %c0_i32 : i32, i32
  }
}

</mosaic_0001>

<bundles_post_ra>
// kernel: tpu_custom_call.1
= control target key start
LH: loop header
LB: loop body
LE: loop exit
PB: predicated region body
PF: predicated region fallthrough
CT: control target
= control target key end

     0   :  { %s1648_s0 = inlined_call_operand.hbm [shape: bf16[64,128], index: 0, kind: input, shape index: {}]   ;;  %s1649_s1 = inlined_call_operand.hbm [shape: bf16[128,128], index: 1, kind: input, shape index: {}]   ;;  %s1650_s2 = inlined_call_operand.vmem [shape: f32[1,128], index: 2, kind: input, shape index: {}]   ;;  %s1651_s3 = inlined_call_operand.hbm [shape: bf16[128,128], index: 3, kind: input, shape index: {}]   ;;  %s1652_s4 = inlined_call_operand.vmem [shape: f32[1,128], index: 4, kind: input, shape index: {}]   ;;  %s1653_s5 = inlined_call_operand.hbm [shape: bf16[128,128], index: 5, kind: input, shape index: {}]   ;;  %s1654_s6 = inlined_call_operand.vmem [shape: f32[1,128], index: 6, kind: input, shape index: {}]   ;;  %s1655_s7 = inlined_call_operand.hbm [shape: f32[64,128], index: 7, kind: output, shape index: {}]  }
   0x1   :  { %1658 = sst [smem:[#allocation15_spill]] %s1649_s1 }
   0x2   :  { %12 = vsyncpa [#allocation3], 0 }
   0x3   :  { %14 = vsyncpa [#allocation3 + $0x1], 0 }
   0x4   :  { %15 = vsyncpa [#allocation6], 0 }
   0x5   :  { %16 = vsyncpa [#allocation9], 0 }
   0x6   :  { %17 = vsyncpa [#allocation4], 0 }
   0x7   :  { %19 = vsyncpa [#allocation4 + $0x1], 0  ;;  %s1441_s24 = smov 0   ;;  %s1443_s25 = smov 0  }
   0x8   :  { %s1445_s26 = smov 0   ;;  %s1447_s27 = smov 0  }
   0x9 LB: > { %s1462_s28 = sadd.s32 4294967295, %s1392_s27   ;;  %s914_s29 = sadd.s32 4294967294, %s1392_s27   ;;  %s1392_s27 = sphi %s1447_s27, %s1672_s27   ;;  %s1388_s26 = sphi %s1445_s26, %s1671_s26   ;;  %s1384_s25 = sphi %s1443_s25, %s1670_s25   ;;  %s1380_s24 = sphi %s1441_s24, %s1669_s24  }
   0xa   : > { %p45_p0 = scmp.ne.s32.totalorder %s1384_s25, %s1380_s24  ;;  %p46_p1 = scmp.eq.s32.totalorder %s1462_s28, 0 }
   0xb   : > { %p195_p2 = scmp.eq.s32.totalorder %s1462_s28, 1  ;;  %p201_p3 = scmp.eq.s32.totalorder %s914_s29, 1 }
   0xc   : > { %p1471_p4 = por %p46_p1, %p45_p0  ;;  %p915_p5 = scmp.ge.s32.totalorder %s1392_s27, 1 }
   0xd   : > { %p1476_p6 = por %p201_p3, %p45_p0  ;;  %p208_p7 = scmp.lt.s32.totalorder %s1392_s27, 3 }
   0xe   : > { %s1661_s1 = sld [smem:[#allocation15_spill]]  ;;  %s1394_s13 = smov [#allocation5]  }
   0xf   : > { %p1484_p8 = pnand %p915_p5, %p208_p7  ;;  %s221_s14 = sshll.u32 %s1394_s13, 4  ;;  %s222_s14 = int_to_ptr.vmem [resolvable:$true] %s221_s14 }
  0x10   : > { %s236_s18 = sshll.u32 %s1651_s3, 4  ;;  %s1656_s19 = smov 64   ;;  %s237_s18 = int_to_ptr.hbm [resolvable:$true] %s236_s18 }
  0x11   : > { %p1098_p9 = pneg %p1484_p8  ;;  %s1657_s20 = smov 4  }
  0x12   : > { %s1397_s21 = smov [#allocation7]   ;;  %s253_s9 = sshll.u32 %s1653_s5, 4  ;;  %s254_s9 = int_to_ptr.hbm [resolvable:$true] %s253_s9 }
  0x13   : > { %p1492_p10 = pnand %p1098_p9, %p46_p1  ;;  %s238_s22 = sshll.u32 %s1397_s21, 4  ;;  %s239_s22 = int_to_ptr.vmem [resolvable:$true] %s238_s22 }
  0x14   : > { %s219_s11 = sshll.u32 %s1661_s1, 4  ;;  %s1398_s10 = smov [#allocation8]   ;;  %s220_s11 = int_to_ptr.hbm [resolvable:$true] %s219_s11 }
  0x15   : > { %1101 = dma.hbm_to_vmem [thread:$0]  (!%p1492_p10), %s220_s11, 1024, %s222_s14, [#allocation6], %s1656_s19, %s1656_s19, %s1657_s20  }
  0x16   : > { %1104 = dma.hbm_to_vmem [thread:$0]  (!%p1492_p10), %s237_s18, 1024, %s239_s22, [#allocation6], %s1656_s19, %s1656_s19, %s1657_s20  }
  0x17   : > { %s255_s11 = sshll.u32 %s1398_s10, 4  ;;  %s1514_s13 = sadd.s32 1, %s1392_s27   ;;  %s256_s11 = int_to_ptr.vmem [resolvable:$true] %s255_s11 }
  0x18   : > { %1107 = dma.hbm_to_vmem [thread:$0]  (!%p1492_p10), %s254_s9, 1024, %s256_s11, [#allocation9], %s1656_s19, %s1656_s19, %s1657_s20  }
  0x19   : > { %s29_s14 = ssub.s32 %s1392_s27, %s1514_s13  ;;  %s32_s16 = sadd.s32 1, %s1388_s26 }
  0x1a   : > { %p30_p12 = scmp.eq.s32.totalorder %s29_s14, 0  ;;  %p39_p13 = scmp.ne.s32.totalorder %s1388_s26, %s1384_s25 }
  0x1b   : > { %p40_p0 = scmp.eq.s32.totalorder %s1392_s27, 0  ;;  %p1119_p5 = scmp.lt.s32.totalorder %s1392_s27, 2 }
  0x1c   : > { %s1528_s17 = scalar_select %p30_p12, %s1388_s26, %s32_s16  }
  0x1d   : > { %p1532_p3 = por %p195_p2, %p39_p13  ;;  %s272_s21 = sand.u32 1, %s1388_s26  }
  0x1e   : > { %s1046_s15 = sshll.u32 %s1392_s27, 4  ;;  %p41_p7 = por %p40_p0, %p39_p13 }
  0x1f   : > { %s920_s22 = sshll.u32 %s272_s21, 4  ;;  %s281_s9 = scalar_lea.hbm %s1648_s0, %s1046_s15 }
  0x20   : > { %s282_s10 = sshll.u32 %s281_s9, 4  ;;  %s276_s11 = scalar_lea.vmem [#allocation2], %s920_s22  ;;  %s283_s10 = int_to_ptr.hbm [resolvable:$true] %s282_s10 }
  0x21   : > { %s284_s14 = sshll.u32 %s276_s11, 4  ;;  %p1542_p9 = pnand %p1119_p5, %p41_p7  ;;  %s285_s14 = int_to_ptr.vmem [resolvable:$true] %s284_s14 }
  0x22   : > { %s273_s19 = scalar_lea.sflag [#allocation3], %s272_s21  ;;  %s1288_s20 = sshra.s32 %s283_s10, 4  ;;  %s1289_s20 = int_to_ptr.hbm [resolvable:$true] %s1288_s20 }
  0x23   : > { %s1290_s1 = scalar_lea.hbm %s1289_s20, 16  ;;  %p1292_p10 = pneg %p1542_p9 }
  0x24   : > { %p1291_p2 = scmp.ne.s32.totalorder %s1289_s20, %s1290_s1  ;;  %s1295_s22 = scalar_lea.hbm %s1648_s0, 32 }
  0x25   : > { %p1296_p0 = scmp.lt.s32.totalorder %s1289_s20, %s1648_s0  ;;  %p1297_p5 = scmp.lt.s32.totalorder %s1295_s22, %s1290_s1 }
  0x26   : > { %p1293_p12 = pnand %p1292_p10, %p1291_p2 }
  0x27   : > { %p1298_p7 = por %p1297_p5, %p1296_p0 }
  0x28   : > { %p1294_p13 = pneg %p1293_p12 }
  0x2a   : > { %p1299_p11 = pnand %p1298_p7, %p1294_p13 }
  0x2c   : > { %1302 = shalt.err (!%p1299_p11)
}
  0x2d   : > { %s1666_s21 = smov 4   ;;  %s1667_s11 = smov 64  }
  0x2e   : > { %1111 = dma.hbm_to_vmem [thread:$0]  (!%p1542_p9), %s283_s10, 256, %s285_s14, %s273_s19, %s1667_s11, %s1667_s11, %s1666_s21  }
  0x2f   : > { %296 = sbr.rel (%p1484_p8) target bundleno = 587 (0x24b), region = 48  ;;  %s1562_s15 = sand.u32 (!%p1484_p8), 1, %s1384_s25  }
  0x30   : > { %s924_s20 = sshll.u32 (!%p1484_p8), %s1562_s15, 4  ;;  %s299_s1 = scalar_lea.sflag (!%p1484_p8), [#allocation3], %s1562_s15 }
  0x31   : > { %s302_s23 = scalar_lea.vmem (!%p1484_p8), [#allocation2], %s924_s20 }
  0x34   : > { %1363 = dma.done.wait (%p1471_p4), %s299_s1, 256  }
  0x35   : > { %1365 = vsyncadd (%p1471_p4), %s299_s1, 4294967040 }
  0x36   : > { %1367 = dma.done.wait (%p46_p1), [#allocation6], 2048  }
  0x37   : > { %1369 = vsyncadd (%p46_p1), [#allocation6], 4294965248 }
  0x38   : > { %1371 = dma.done.wait (%p46_p1), [#allocation9], 1024  }
  0x39   : > { %1373 = vsyncadd (%p46_p1), [#allocation9], 4294966272  ;;  %v1056_v0 = vld [vmem:[#allocation5 + $0x38] sm:$0xff]  ;;  %v1055_v1 = vld [vmem:[#allocation5 + $0x30] sm:$0xff]  ;;  %s928_s14 = sshll.u32 %s1562_s15, 5  ;;  %s1073_s9 = sshll.u32 %s1462_s28, 5 }
  0x3a   : > { %435 = vmatpush.bf16.msra.mxu0 %v1056_v0  ;;  %1074 = vmatpush.bf16.msra.mxu3 %v1056_v0  ;;  %v1054_v2 = vld [vmem:[#allocation5 + $0x28] sm:$0xff]  ;;  %v1053_v3 = vld [vmem:[#allocation5 + $0x20] sm:$0xff]  ;;  %v1052_v4 = vld [vmem:[#allocation5 + $0x18] sm:$0xff]  ;;  %s348_s29 = scalar_lea.vmem [#allocation10], %s928_s14  ;;  %s808_s20 = scalar_lea.hbm %s1655_s7, %s1073_s9 }
  0x3b   : > { %v1051_v5 = vld [vmem:[#allocation5 + $0x10] sm:$0xff]  ;;  %v1050_v6 = vld [vmem:[#allocation5 + $0x8] sm:$0xff]  ;;  %v1049_v7 = vld [vmem:[#allocation5] sm:$0xff]  ;;  %s809_s1 = sshll.u32 %s348_s29, 4  ;;  %s797_s30 = scalar_lea.sflag [#allocation4], %s1562_s15  ;;  %s810_s1 = int_to_ptr.vmem [resolvable:$true] %s809_s1 }
  0x3c   : > { %v1047_v8 = vld [vmem:[%s302_s23] sm:$0xff]  ;;  %v1048_v9 = vld [vmem:[%s302_s23 + $0x8] sm:$0xff]  ;;  %s811_s23 = sshll.u32 %s808_s20, 4  ;;  %s1338_s14 = scalar_lea.hbm %s1655_s7, 64  ;;  %s812_s23 = int_to_ptr.hbm [resolvable:$true] %s811_s23 }
  0x3d   : > { %v1064_v10 = vld [vmem:[#allocation7 + $0x38] sm:$0xff]  ;;  %v1063_v11 = vld [vmem:[#allocation7 + $0x30] sm:$0xff]  ;;  %v1062_v12 = vld [vmem:[#allocation7 + $0x28] sm:$0xff]  ;;  %s1332_s12 = sshra.s32 %s812_s23, 4  ;;  %s1333_s12 = int_to_ptr.hbm [resolvable:$true] %s1332_s12 }
  0x3e   : > { %436 = vmatpush.bf16.msra.mxu0 %v1055_v1  ;;  %1075 = vmatpush.bf16.msra.mxu3 %v1055_v1  ;;  %v1061_v13 = vld [vmem:[#allocation7 + $0x20] sm:$0xff]  ;;  %v1060_v14 = vld [vmem:[#allocation7 + $0x18] sm:$0xff]  ;;  %v1059_v17 = vld [vmem:[#allocation7 + $0x10] sm:$0xff]  ;;  %s1334_s19 = scalar_lea.hbm %s1333_s12, 32  ;;  %p1339_p11 = scmp.lt.s32.totalorder %s1333_s12, %s1655_s7 }
  0x3f   : > { %604 = vmatpush.bf16.msra.mxu1 %v1064_v10  ;;  %v1163_v15 = vld [vmem:[%s1650_s2] ss:$0 sm:$0xff]  ;;  %v1058_v20 = vld [vmem:[#allocation7 + $0x8] sm:$0xff]  ;;  %p1335_p1 = scmp.ne.s32.totalorder %s1333_s12, %s1334_s19  ;;  %p1340_p9 = scmp.lt.s32.totalorder %s1338_s14, %s1334_s19 }
  0x40   : > { %v1057_v24 = vld [vmem:[#allocation7] sm:$0xff] }
  0x41   : > { %p1336_p4 = pnand %p1335_p1, %p1532_p3  ;;  %p1341_p2 = por %p1340_p9, %p1339_p11 }
  0x42   : > { %437 = vmatpush.bf16.msra.mxu0 %v1054_v2  ;;  %1076 = vmatpush.bf16.msra.mxu3 %v1054_v2 }
  0x43   : > { %605 = vmatpush.bf16.msra.mxu1 %v1063_v11  ;;  %p1337_p8 = pneg %p1336_p4 }
  0x45   : > { %p1342_p10 = pnand %p1341_p2, %p1337_p8 }
  0x46   : > { %438 = vmatpush.bf16.msra.mxu0 %v1053_v3  ;;  %1077 = vmatpush.bf16.msra.mxu3 %v1053_v3 }
  0x47   : > { %606 = vmatpush.bf16.msra.mxu1 %v1062_v12 }
  0x4a   : > { %439 = vmatpush.bf16.msra.mxu0 %v1052_v4  ;;  %1078 = vmatpush.bf16.msra.mxu3 %v1052_v4 }
  0x4b   : > { %607 = vmatpush.bf16.msra.mxu1 %v1061_v13 }
  0x4e   : > { %440 = vmatpush.bf16.msra.mxu0 %v1051_v5  ;;  %1079 = vmatpush.bf16.msra.mxu3 %v1051_v5 }
  0x4f   : > { %608 = vmatpush.bf16.msra.mxu1 %v1060_v14 }
  0x52   : > { %441 = vmatpush.bf16.msra.mxu0 %v1050_v6  ;;  %1080 = vmatpush.bf16.msra.mxu3 %v1050_v6 }
  0x53   : > { %609 = vmatpush.bf16.msra.mxu1 %v1059_v17 }
  0x56   : > { %442 = vmatpush.bf16.msra.mxu0 %v1049_v7  ;;  %1081 = vmatpush.bf16.msra.mxu3 %v1049_v7 }
  0x57   : > { %610 = vmatpush.bf16.msra.mxu1 %v1058_v20 }
  0x59   : > { %443 = vmatmul.bf16.vlgmr.msra.gmra.mxu0 %v1047_v8  ;;  %448 = vmatmul.bf16.vlgmr.msra.gmra.mxu3 %v1048_v9 }
  0x5b   : > { %611 = vmatpush.bf16.msra.mxu1 %v1057_v24  ;;  %v1070_v24 = vld [vmem:[#allocation8 + $0x28] sm:$0xff] }
  0xd6   : > { %v444_v16 = vpop.f32.mrf.mxu0 }
  0xd7   : > { %v1581_v18 = vadd.f32 %v1163_v15, %v444_v16 }
  0xd9   : > { %v969_v19 = vmul.f32 -1.442695, %v1581_v18 }
  0xdb   : > { %1166 = vpow2.f32 %v969_v19 }
  0xdc   : > { %v449_v21 = vpop.f32.mrf.mxu3 }
  0xdd   : > { %v1584_v22 = vadd.f32 %v1163_v15, %v449_v21  ;;  %v1072_v21 = vld [vmem:[#allocation8 + $0x38] sm:$0xff] }
  0xde   : > { %v446_v23 = vpop.f32.mrf.mxu0  ;;  %773 = vmatpush.bf16.msra.mxu2 %v1072_v21 }
  0xdf   : > { %v971_v25 = vmul.f32 -1.442695, %v1584_v22  ;;  %v447_v26 = vadd.f32 %v1163_v15, %v446_v23  ;;  %v1071_v23 = vld [vmem:[#allocation8 + $0x30] sm:$0xff] }
  0xe1   : > { %v1167_v27 = vpop.eup %1166  ;;  %v970_v28 = vmul.f32 -1.442695, %v447_v26  ;;  %1168 = vpow2.f32 %v971_v25  ;;  %v1069_v25 = vld [vmem:[#allocation8 + $0x20] sm:$0xff] }
  0xe2   : > { %v466_v29 = vadd.f32 1.0, %v1167_v27  ;;  %774 = vmatpush.bf16.msra.mxu2 %v1071_v23  ;;  %v1164_v27 = vld [vmem:[%s1652_s4] ss:$0 sm:$0xff] }
  0xe3   : > { %1170 = vpow2.f32 %v970_v28  ;;  %v1067_v28 = vld [vmem:[#allocation8 + $0x10] sm:$0xff] }
  0xe4   : > { %1172 = vrcp.f32 %v466_v29  ;;  %v451_v30 = vpop.f32.mrf.mxu3  ;;  %v481_v47 = vand.u32 2147483648, %v466_v29  ;;  %vm475_vm1 = vweird.f32 %v466_v29  ;;  %v479_v48 = vand.u32 2147483647, %v466_v29 }
  0xe5   : > { %v1587_v31 = vadd.f32 %v1163_v15, %v451_v30 }
  0xe6   : > { %v482_v56 = vor.u32 1.1754944e-38, %v481_v47  ;;  %vm480_vm4 = vcmp.eq.f32.partialorder %v479_v48, 8.507059e+37  ;;  %775 = vmatpush.bf16.msra.mxu2 %v1070_v24 }
  0xe7   : > { %v972_v32 = vmul.f32 -1.442695, %v1587_v31  ;;  %v1169_v33 = vpop.eup %1168 }
  0xe8   : > { %v1590_v37 = vadd.f32 1.0, %v1169_v33 }
  0xe9   : > { %v1171_v34 = vpop.eup %1170  ;;  %1174 = vpow2.f32 %v972_v32  ;;  %v1065_v32 = vld [vmem:[#allocation8] sm:$0xff] }
  0xea   : > { %v1173_v35 = vpop.eup %1172  ;;  %v467_v38 = vadd.f32 1.0, %v1171_v34  ;;  %vm505_vm9 = vweird.f32 %v1590_v37  ;;  %v511_v10 = vand.u32 2147483648, %v1590_v37  ;;  %v509_v11 = vand.u32 2147483647, %v1590_v37  ;;  %776 = vmatpush.bf16.msra.mxu2 %v1069_v25 }
  0xeb   : > { %v471_v36 = vmul.f32 %v1173_v35, %v466_v29  ;;  %vm476_vm0 = vweird.f32 %v1173_v35 }
  0xec   : > { %1176 = vrcp.f32 %v467_v38  ;;  %vm477_vm2 = vmor %vm475_vm1, %vm476_vm0  ;;  %v494_v50 = vand.u32 2147483647, %v467_v38  ;;  %v496_v51 = vand.u32 2147483648, %v467_v38  ;;  %vm490_vm5 = vweird.f32 %v467_v38 }
  0xed   : > { %v472_v39 = vsub.f32 1.0, %v471_v36  ;;  %1178 = vrcp.f32 %v1590_v37  ;;  %v512_v15 = vor.u32 1.1754944e-38, %v511_v10  ;;  %vm510_vm15 = vcmp.eq.f32.partialorder %v509_v11, 8.507059e+37 }
  0xee   : > { %v497_v60 = vor.u32 1.1754944e-38, %v496_v51  ;;  %vm495_vm7 = vcmp.eq.f32.partialorder %v494_v50, 8.507059e+37 }
  0xef   : > { %v1175_v40 = vpop.eup %1174  ;;  %v473_v41 = vmul.f32 %v1173_v35, %v472_v39 }
  0xf0   : > { %v469_v42 = vadd.f32 1.0, %v1175_v40 }
  0xf1   : > { %v474_v44 = vadd.f32 %v1173_v35, %v473_v41 }
  0xf2   : > { %1180 = vrcp.f32 %v469_v42  ;;  %v1177_v43 = vpop.eup %1176  ;;  %v526_v7 = vand.u32 2147483648, %v469_v42  ;;  %vm520_vm11 = vweird.f32 %v469_v42  ;;  %v524_v9 = vand.u32 2147483647, %v469_v42 }
  0xf3   : > { %v486_v45 = vmul.f32 %v1177_v43, %v467_v38  ;;  %v1179_v46 = vpop.eup %1178  ;;  %v478_v53 = vsel %vm477_vm2, %v1173_v35, %v474_v44  ;;  %vm491_vm3 = vweird.f32 %v1177_v43 }
  0xf4   : > { %v501_v54 = vmul.f32 %v1179_v46, %v1590_v37  ;;  %v483_v59 = vsel %vm480_vm4, %v482_v56, %v478_v53  ;;  %vm492_vm6 = vmor %vm490_vm5, %vm491_vm3  ;;  %vm506_vm10 = vweird.f32 %v1179_v46  ;;  %v527_v13 = vor.u32 1.1754944e-38, %v526_v7 }
  0xf5   : > { %v487_v49 = vsub.f32 1.0, %v486_v45  ;;  %v530_v1 = vmul.f32 %v483_v59, %v1581_v18  ;;  %vm507_vm13 = vmor %vm505_vm9, %vm506_vm10  ;;  %vm525_vm14 = vcmp.eq.f32.partialorder %v524_v9, 8.507059e+37 }
  0xf6   : > { %v502_v62 = vsub.f32 1.0, %v501_v54 }
  0xf7   : > { %v488_v55 = vmul.f32 %v1177_v43, %v487_v49 }
  0xf8   : > { %v1181_v52 = vpop.eup %1180  ;;  %v503_v4 = vmul.f32 %v1179_v46, %v502_v62 }
  0xf9   : > { %v516_v57 = vmul.f32 %v1181_v52, %v469_v42  ;;  %v489_v58 = vadd.f32 %v1177_v43, %v488_v55  ;;  %vm521_vm8 = vweird.f32 %v1181_v52 }
  0xfa   : > { %v504_v8 = vadd.f32 %v1179_v46, %v503_v4  ;;  %vm522_vm12 = vmor %vm520_vm11, %vm521_vm8 }
  0xfb   : > { %v517_v61 = vsub.f32 1.0, %v516_v57  ;;  %v493_v63 = vsel %vm492_vm6, %v1177_v43, %v489_v58 }
  0xfc   : > { %v498_v0 = vsel %vm495_vm7, %v497_v60, %v493_v63  ;;  %v508_v14 = vsel %vm507_vm13, %v1179_v46, %v504_v8 }
  0xfd   : > { %v531_v2 = vmul.f32 %v498_v0, %v447_v26  ;;  %v518_v3 = vmul.f32 %v1181_v52, %v517_v61  ;;  %v513_v17 = vsel %vm510_vm15, %v512_v15, %v508_v14  ;;  %v1068_v26 = vld [vmem:[#allocation8 + $0x18] sm:$0xff] }
  0xfe   : > { %v532_v19 = vmul.f32 %v513_v17, %v1584_v22  ;;  %777 = vmatpush.bf16.msra.mxu2 %v1068_v26 }
  0xff   : > { %v534_v5 = vpack.c.bf16 %v531_v2, %v530_v1  ;;  %v519_v6 = vadd.f32 %v1181_v52, %v518_v3 }
 0x101   : > { %612 = vmatmul.bf16.vlgmr.msra.gmra.mxu1 %v534_v5  ;;  %v523_v12 = vsel %vm522_vm12, %v1181_v52, %v519_v6 }
 0x102   : > { %v528_v16 = vsel %vm525_vm14, %v527_v13, %v523_v12  ;;  %778 = vmatpush.bf16.msra.mxu2 %v1067_v28 }
 0x103   : > { %v533_v18 = vmul.f32 %v528_v16, %v1587_v31  ;;  %v1066_v31 = vld [vmem:[#allocation8 + $0x8] sm:$0xff] }
 0x105   : > { %v535_v20 = vpack.c.bf16 %v533_v18, %v532_v19 }
 0x106   : > { %779 = vmatpush.bf16.msra.mxu2 %v1066_v31 }
 0x10a   : > { %780 = vmatpush.bf16.msra.mxu2 %v1065_v32  ;;  %v1165_v32 = vld [vmem:[%s1654_s6] ss:$0 sm:$0xff] }
 0x111   : > { %617 = vmatmul.bf16.gmra.mxu1 %v535_v20 }
 0x17e   : > { %v613_v29 = vpop.f32.mrf.mxu1 }
 0x17f   : > { %v614_v30 = vadd.f32 %v1164_v27, %v613_v29 }
 0x181   : > { %v1005_v22 = vmul.f32 -1.442695, %v614_v30 }
 0x183   : > { %1182 = vpow2.f32 %v1005_v22 }
 0x186   : > { %v615_v33 = vpop.f32.mrf.mxu1 }
 0x187   : > { %v616_v34 = vadd.f32 %v1164_v27, %v615_v33 }
 0x189   : > { %v1183_v35 = vpop.eup %1182  ;;  %v1006_v36 = vmul.f32 -1.442695, %v616_v34 }
 0x18a   : > { %v635_v37 = vadd.f32 1.0, %v1183_v35 }
 0x18b   : > { %1184 = vpow2.f32 %v1006_v36 }
 0x18c   : > { %1186 = vrcp.f32 %v635_v37  ;;  %v650_v55 = vand.u32 2147483648, %v635_v37  ;;  %vm644_vm1 = vweird.f32 %v635_v37  ;;  %v648_v56 = vand.u32 2147483647, %v635_v37 }
 0x18e   : > { %v618_v38 = vpop.f32.mrf.mxu1  ;;  %v651_v62 = vor.u32 1.1754944e-38, %v650_v55  ;;  %vm649_vm4 = vcmp.eq.f32.partialorder %v648_v56, 8.507059e+37 }
 0x18f   : > { %v1603_v39 = vadd.f32 %v1164_v27, %v618_v38 }
 0x191   : > { %v1185_v40 = vpop.eup %1184  ;;  %v1007_v41 = vmul.f32 -1.442695, %v1603_v39 }
 0x192   : > { %v1187_v42 = vpop.eup %1186  ;;  %v636_v43 = vadd.f32 1.0, %v1185_v40 }
 0x193   : > { %v640_v44 = vmul.f32 %v1187_v42, %v635_v37  ;;  %1188 = vpow2.f32 %v1007_v41  ;;  %vm645_vm0 = vweird.f32 %v1187_v42 }
 0x194   : > { %1190 = vrcp.f32 %v636_v43  ;;  %vm646_vm2 = vmor %vm644_vm1, %vm645_vm0  ;;  %v665_v58 = vand.u32 2147483648, %v636_v43  ;;  %v663_v61 = vand.u32 2147483647, %v636_v43  ;;  %vm659_vm5 = vweird.f32 %v636_v43 }
 0x195   : > { %v641_v45 = vsub.f32 1.0, %v640_v44 }
 0x196   : > { %v620_v46 = vpop.f32.mrf.mxu1  ;;  %v666_v3 = vor.u32 1.1754944e-38, %v665_v58  ;;  %vm664_vm7 = vcmp.eq.f32.partialorder %v663_v61, 8.507059e+37 }
 0x197   : > { %v642_v47 = vmul.f32 %v1187_v42, %v641_v45  ;;  %v1606_v48 = vadd.f32 %v1164_v27, %v620_v46 }
 0x199   : > { %v1189_v49 = vpop.eup %1188  ;;  %v1008_v50 = vmul.f32 -1.442695, %v1606_v48  ;;  %v643_v53 = vadd.f32 %v1187_v42, %v642_v47 }
 0x19a   : > { %v1191_v51 = vpop.eup %1190  ;;  %v637_v52 = vadd.f32 1.0, %v1189_v49 }
 0x19b   : > { %v655_v54 = vmul.f32 %v1191_v51, %v636_v43  ;;  %1192 = vpow2.f32 %v1008_v50  ;;  %v647_v59 = vsel %vm646_vm2, %v1187_v42, %v643_v53  ;;  %vm660_vm3 = vweird.f32 %v1191_v51 }
 0x19c   : > { %1194 = vrcp.f32 %v637_v52  ;;  %v652_v2 = vsel %vm649_vm4, %v651_v62, %v647_v59  ;;  %vm661_vm6 = vmor %vm659_vm5, %vm660_vm3  ;;  %v680_v16 = vand.u32 2147483648, %v637_v52  ;;  %vm674_vm9 = vweird.f32 %v637_v52 }
 0x19d   : > { %v656_v57 = vsub.f32 1.0, %v655_v54  ;;  %v699_v8 = vmul.f32 %v652_v2, %v614_v30  ;;  %v678_v17 = vand.u32 2147483647, %v637_v52 }
 0x19e   : > { %v681_v24 = vor.u32 1.1754944e-38, %v680_v16 }
 0x19f   : > { %v657_v60 = vmul.f32 %v1191_v51, %v656_v57  ;;  %vm679_vm12 = vcmp.eq.f32.partialorder %v678_v17, 8.507059e+37 }
 0x1a1   : > { %v1193_v63 = vpop.eup %1192  ;;  %v658_v0 = vadd.f32 %v1191_v51, %v657_v60 }
 0x1a2   : > { %v1195_v1 = vpop.eup %1194  ;;  %v638_v4 = vadd.f32 1.0, %v1193_v63 }
 0x1a3   : > { %v662_v5 = vsel %vm661_vm6, %v1191_v51, %v658_v0  ;;  %v670_v6 = vmul.f32 %v1195_v1, %v637_v52  ;;  %vm675_vm8 = vweird.f32 %v1195_v1 }
 0x1a4   : > { %v667_v7 = vsel %vm664_vm7, %v666_v3, %v662_v5  ;;  %1196 = vrcp.f32 %v638_v4  ;;  %vm676_vm10 = vmor %vm674_vm9, %vm675_vm8  ;;  %v695_v19 = vand.u32 2147483648, %v638_v4  ;;  %v693_v23 = vand.u32 2147483647, %v638_v4 }
 0x1a5   : > { %v700_v9 = vmul.f32 %v667_v7, %v616_v34  ;;  %v671_v10 = vsub.f32 1.0, %v670_v6  ;;  %vm689_vm13 = vweird.f32 %v638_v4 }
 0x1a6   : > { %v696_v27 = vor.u32 1.1754944e-38, %v695_v19  ;;  %vm694_vm15 = vcmp.eq.f32.partialorder %v693_v23, 8.507059e+37 }
 0x1a7   : > { %v672_v11 = vmul.f32 %v1195_v1, %v671_v10  ;;  %v703_v12 = vpack.c.bf16 %v700_v9, %v699_v8 }
 0x1a9   : > { %781 = vmatmul.bf16.vlgmr.msra.gmra.mxu2 %v703_v12  ;;  %v673_v14 = vadd.f32 %v1195_v1, %v672_v11 }
 0x1aa   : > { %v1197_v13 = vpop.eup %1196 }
 0x1ab   : > { %v685_v15 = vmul.f32 %v1197_v13, %v638_v4  ;;  %v677_v20 = vsel %vm676_vm10, %v1195_v1, %v673_v14  ;;  %vm690_vm11 = vweird.f32 %v1197_v13 }
 0x1ac   : > { %v682_v26 = vsel %vm679_vm12, %v681_v24, %v677_v20  ;;  %vm691_vm14 = vmor %vm689_vm13, %vm690_vm11 }
 0x1ad   : > { %v686_v18 = vsub.f32 1.0, %v685_v15  ;;  %v701_v30 = vmul.f32 %v682_v26, %v1603_v39 }
 0x1af   : > { %v687_v21 = vmul.f32 %v1197_v13, %v686_v18 }
 0x1b1   : > { %v688_v25 = vadd.f32 %v1197_v13, %v687_v21 }
 0x1b3   : > { %v692_v28 = vsel %vm691_vm14, %v1197_v13, %v688_v25 }
 0x1b4   : > { %v697_v29 = vsel %vm694_vm15, %v696_v27, %v692_v28 }
 0x1b5   : > { %v702_v22 = vmul.f32 %v697_v29, %v1606_v48 }
 0x1b7   : > { %v704_v31 = vpack.c.bf16 %v702_v22, %v701_v30 }
 0x1b9   : > { %786 = vmatmul.bf16.gmra.mxu2 %v704_v31 }
 0x22c   : > { %v782_v33 = vpop.f32.mrf.mxu2 }
 0x22d   : > { %v783_v34 = vadd.f32 %v1165_v32, %v782_v33 }
 0x22f   : > { %792 = vst [vmem:[%s348_s29] sm:$0xff] %v783_v34 }
 0x234   : > { %v784_v35 = vpop.f32.mrf.mxu2 }
 0x235   : > { %v785_v36 = vadd.f32 %v1165_v32, %v784_v35 }
 0x237   : > { %793 = vst [vmem:[%s348_s29 + $0x8] sm:$0xff] %v785_v36 }
 0x23c   : > { %v787_v37 = vpop.f32.mrf.mxu2 }
 0x23d   : > { %v788_v38 = vadd.f32 %v1165_v32, %v787_v37 }
 0x23f   : > { %794 = vst [vmem:[%s348_s29 + $0x10] sm:$0xff] %v788_v38 }
 0x244   : > { %v789_v39 = vpop.f32.mrf.mxu2 }
 0x245   : > { %v790_v40 = vadd.f32 %v1165_v32, %v789_v39 }
 0x247   : > { %795 = vst [vmem:[%s348_s29 + $0x18] sm:$0xff] %v790_v40 }
 0x248   : > { %1345 = shalt.err (!%p1342_p10)
}
 0x249   : > { %s1399_s15 = smov 128   ;;  %s1400_s29 = smov 8  }
 0x24a   : > { %1096 = dma.vmem_to_hbm [thread:$0]  (%p1532_p3), %s810_s1, 512, %s812_s23, %s797_s30, %s1399_s15, %s1399_s15, %s1400_s29  }
 0x24b PF: > { %s826_s9 = sand.u32 1, %s1380_s24   ;;  %p1668_p12 = scmp.ge.s32.totalorder %s1392_s27, 2 }
 0x24c   : > { %s827_s21 = scalar_lea.sflag [#allocation4], %s826_s9 }
 0x24d   : > { %p1113_p13 = pnand %p1668_p12, %p1476_p6 }
 0x24f   : > { %p1114_p0 = pneg %p1113_p13 }
 0x251   : > { %1375 = dma.done.wait (%p1114_p0), %s827_s21, 512  }
 0x252   : > { %1377 = vsyncadd (%p1114_p0), %s827_s21, 4294966784  ;;  %p22_p5 = scmp.ge.s32.totalorder %s1514_s13, 4   ;;  %s1669_s24 = smov %s1384_s25 }
 0x253   : > { %s1670_s25 = smov %s1388_s26  ;;  %s1671_s26 = smov %s1528_s17 }
 0x254   : > { %s1672_s27 = smov %s1514_s13  ;;  %24 = sbr.rel (!%p22_p5) target bundleno = 9 (0x9), region = 105 }
 0x259   :  { %833 = vsyncpa [#allocation3], 1 }
 0x25a   :  { %835 = vsyncpa [#allocation3 + $0x1], 1 }
 0x25b   :  { %836 = vsyncpa [#allocation6], 1 }
 0x25c   :  { %837 = vsyncpa [#allocation9], 1 }
 0x25d   :  { %838 = vsyncpa [#allocation4], 1 }
 0x25e   :  { %840 = vsyncpa [#allocation4 + $0x1], 1 }

</bundles_post_ra>
